<compile_context>
chip_gen: v7x
topology: tpu7x:2x2x1
jax: 0.10.0
libtpu: 0.0.40
codegen_flags: <defaults>
</compile_context>

<pallas_src>
import jax
import jax.numpy as jnp
from jax.experimental import pallas as pl
from jax.experimental.pallas import tpu as pltpu


def _fc_kernel(x_ref, w1_ref, w2s_ref, o_ref, hid_ref):
    # hidden = relu(x @ w1.T)                       -> (TILE_N, h), in VMEM scratch
    hid_ref[...] = jnp.maximum(
        jax.lax.dot_general(
            x_ref[...], w1_ref[...],
            dimension_numbers=(((1,), (1,)), ((), ())),   # contract d with d
            preferred_element_type=jnp.float32,
        ),
        0.0,
    )
    # out = (w2*scale) @ hidden.T                   -> (1, TILE_N)  (lane-dense)
    o_ref[...] = jax.lax.dot_general(
        w2s_ref[...], hid_ref[...],
        dimension_numbers=(((1,), (1,)), ((), ())),       # contract h with h
        preferred_element_type=jnp.float32,
    )


def _fc_kernel_bias(x_ref, w1_ref, b_ref, w2s_ref, o_ref, hid_ref):
    hid_ref[...] = jnp.maximum(
        jax.lax.dot_general(
            x_ref[...], w1_ref[...],
            dimension_numbers=(((1,), (1,)), ((), ())),
            preferred_element_type=jnp.float32,
        )
        + b_ref[...],                                     # (1,h) broadcast over rows
        0.0,
    )
    o_ref[...] = jax.lax.dot_general(
        w2s_ref[...], hid_ref[...],
        dimension_numbers=(((1,), (1,)), ((), ())),
        preferred_element_type=jnp.float32,
    )


def fc_forward(x, w1, w2, scale, b=None, tile_n=512):
    """x: (N, d), w1: (h, d), w2: (1, h), b: (h,) / scalar / None. Returns (N,)."""
    N, d = x.shape
    h = w1.shape[0]

    x = x.astype(jnp.float32)
    w1 = w1.astype(jnp.float32)
    # Fold output scale into w2 on the host side (one fewer VPU mul per tile).
    w2s = (jnp.asarray(w2, jnp.float32) * jnp.float32(scale)).reshape(1, h)

    has_bias = not (b is None or (isinstance(b, (int, float)) and float(b) == 0.0))

    # Pick TILE_N: full (sublane-rounded) N if small, otherwise a fixed tile
    # that is a multiple of 128 so output blocks stay lane-aligned.
    if N <= tile_n:
        tile = ((N + 7) // 8) * 8
    else:
        tile = tile_n
    n_tiles = pl.cdiv(N, tile)
    N_pad = n_tiles * tile
    if N_pad != N:
        x = jnp.pad(x, ((0, N_pad - N), (0, 0)))

    in_arrays = [x, w1]
    in_specs = [
        pl.BlockSpec((tile, d), lambda i: (i, 0)),   # x: pipelined over N tiles
        pl.BlockSpec((h, d), lambda i: (0, 0)),      # w1: VMEM-resident
    ]
    if has_bias:
        b_arr = jnp.broadcast_to(jnp.asarray(b, jnp.float32), (h,)).reshape(1, h)
        in_arrays.append(b_arr)
        in_specs.append(pl.BlockSpec((1, h), lambda i: (0, 0)))
        kernel = _fc_kernel_bias
    else:
        kernel = _fc_kernel
    in_arrays.append(w2s)
    in_specs.append(pl.BlockSpec((1, h), lambda i: (0, 0)))

    # VMEM budget (f32 bytes): double-buffered x tiles + resident weights/bias +
    # hidden scratch + double-buffered output tiles; 2x headroom, clamped.
    vmem_budget = 4 * (2 * tile * d + h * d + 4 * h + tile * h + 2 * 2 * tile)
    vmem_limit = int(min(96 << 20, max(16 << 20, 2 * vmem_budget)))

    cost = pl.CostEstimate(
        flops=2 * N_pad * h * d + 2 * N_pad * h,
        transcendentals=0,
        bytes_accessed=4 * (N_pad * d + h * d + h + N_pad),
    )

    out = pl.pallas_call(
        kernel,
        out_shape=jax.ShapeDtypeStruct((1, N_pad), jnp.float32),
        grid=(n_tiles,),
        in_specs=in_specs,
        out_specs=pl.BlockSpec((1, tile), lambda i: (0, i)),   # lane-dense output
        scratch_shapes=[pltpu.VMEM((tile, h), jnp.float32)],
        compiler_params=pltpu.CompilerParams(
            dimension_semantics=("parallel",),
            vmem_limit_bytes=vmem_limit,
        ),
        cost_estimate=cost,
    )(*in_arrays)

    # torch: (N, 1).squeeze() -> (N,); drop padded rows.
    return out[0, :N]


def fc_reference(x, w1, b, w2, scale):
    bb = jnp.asarray(0.0 if b is None else b, jnp.float32)
    hidden = jnp.maximum(x @ w1.T + bb, 0.0)
    return (hidden @ w2.T).squeeze() * scale


if __name__ == "__main__":
    key = jax.random.PRNGKey(0)
    k_x, k_w1, k_w2, k_b, k_x2 = jax.random.split(key, 5)

    # Shapes implied by the module: batch N, input dim d, hidden h.
    N, d, h = 8, 32, 128
    scale = 1.0 / h                     # mean-field default (scale=None)

    x = jax.random.normal(k_x, (N, d), dtype=jnp.float32)
    w1 = jax.random.normal(k_w1, (h, d), dtype=jnp.float32)   # w1_init='normal'
    w2 = jax.random.normal(k_w2, (1, h), dtype=jnp.float32)   # w2_init='normal'

    # 1) default path: bias=False (b == 0)
    out = fc_forward(x, w1, w2, scale, b=0.0)
    jax.block_until_ready(out)
    ref = fc_reference(x, w1, 0.0, w2, scale)
    assert out.shape == (N,)
    assert jnp.allclose(out, ref, atol=1e-5, rtol=1e-5)

    # 2) bias=True path
    b_vec = jax.random.normal(k_b, (h,), dtype=jnp.float32)
    out_b = fc_forward(x, w1, w2, scale, b=b_vec)
    jax.block_until_ready(out_b)
    ref_b = fc_reference(x, w1, b_vec, w2, scale)
    assert jnp.allclose(out_b, ref_b, atol=1e-5, rtol=1e-5)

    # 3) multi-tile + padded path (exercises pipelining / lane-dense tiles)
    N2 = 700
    x2 = jax.random.normal(k_x2, (N2, d), dtype=jnp.float32)
    out2 = fc_forward(x2, w1, w2, scale, b=0.0)
    jax.block_until_ready(out2)
    ref2 = fc_reference(x2, w1, 0.0, w2, scale)
    assert out2.shape == (N2,)
    assert jnp.allclose(out2, ref2, atol=1e-4, rtol=1e-5)

    print("KERNEL_OK")
</pallas_src>

<mosaic_0001>
module attributes {stable_mosaic.version = 11 : i64} {
  func.func @_fc_kernel(%arg0: i32, %arg1: memref<8x32xf32, #tpu.memory_space<vmem>>, %arg2: memref<128x32xf32, #tpu.memory_space<vmem>>, %arg3: memref<1x128xf32, #tpu.memory_space<vmem>>, %arg4: memref<1x8xf32, #tpu.memory_space<vmem>>, %arg5: memref<8x128xf32, #tpu.memory_space<vmem>>) attributes {dimension_semantics = [#tpu.dimension_semantics<parallel>], iteration_bounds = array<i64: 1>, scalar_prefetch = 0 : i64, scratch_operands = 1 : i64, tpu.core_type = #tpu.core_type<tc>, window_params = [{transform_indices = @transform_0, window_bounds = array<i64: 8, 32>}, {pipeline_mode = #tpu.pipeline_mode<synchronous>, transform_indices = @transform_1, window_bounds = array<i64: 128, 32>}, {pipeline_mode = #tpu.pipeline_mode<synchronous>, transform_indices = @transform_2, window_bounds = array<i64: 1, 128>}, {transform_indices = @transform_3, window_bounds = array<i64: 1, 8>}]} {
    %c0 = arith.constant 0 : index
    %c0_0 = arith.constant 0 : index
    %0 = vector.load %arg1[%c0, %c0_0] : memref<8x32xf32, #tpu.memory_space<vmem>>, vector<8x32xf32>
    %c0_1 = arith.constant 0 : index
    %c0_2 = arith.constant 0 : index
    %1 = vector.load %arg2[%c0_1, %c0_2] : memref<128x32xf32, #tpu.memory_space<vmem>>, vector<128x32xf32>
    %cst = arith.constant dense<0.000000e+00> : vector<8x128xf32>
    %2 = tpu.matmul %0, %1, %cst {dimension_numbers = #tpu.dot_dimension_numbers<[1], [1], [0], [0], [0, 0, 1, 0], [], []>} : vector<8x32xf32>, vector<128x32xf32>, vector<8x128xf32> -> vector<8x128xf32>
    %cst_3 = arith.constant 0.000000e+00 : f32
    %3 = vector.broadcast %cst_3 : f32 to vector<8x128xf32>
    %4 = arith.maximumf %2, %3 : vector<8x128xf32>
    %c0_4 = arith.constant 0 : index
    %c0_5 = arith.constant 0 : index
    %5 = vector.load %arg5[%c0_4, %c0_5] : memref<8x128xf32, #tpu.memory_space<vmem>>, vector<8x128xf32>
    tpu.vector_store %arg5[%c0_4, %c0_5], %4 {strides = array<i32>} : memref<8x128xf32, #tpu.memory_space<vmem>>, vector<8x128xf32>,
    %c0_6 = arith.constant 0 : index
    %c0_7 = arith.constant 0 : index
    %6 = vector.load %arg3[%c0_6, %c0_7] : memref<1x128xf32, #tpu.memory_space<vmem>>, vector<1x128xf32>
    %c0_8 = arith.constant 0 : index
    %c0_9 = arith.constant 0 : index
    %7 = vector.load %arg5[%c0_8, %c0_9] : memref<8x128xf32, #tpu.memory_space<vmem>>, vector<8x128xf32>
    %cst_10 = arith.constant dense<0.000000e+00> : vector<1x8xf32>
    %8 = tpu.matmul %6, %7, %cst_10 {dimension_numbers = #tpu.dot_dimension_numbers<[1], [1], [0], [0], [0, 0, 1, 0], [], []>} : vector<1x128xf32>, vector<8x128xf32>, vector<1x8xf32> -> vector<1x8xf32>
    %c0_11 = arith.constant 0 : index
    %c0_12 = arith.constant 0 : index
    %9 = vector.load %arg4[%c0_11, %c0_12] : memref<1x8xf32, #tpu.memory_space<vmem>>, vector<1x8xf32>
    tpu.vector_store %arg4[%c0_11, %c0_12], %8 {strides = array<i32>} : memref<1x8xf32, #tpu.memory_space<vmem>>, vector<1x8xf32>,
    return
  }
  func.func @transform_0(%arg0: i32) -> (i32, i32) {
    %c0_i32 = arith.constant 0 : i32
    %c0_i32_0 = arith.constant 0 : i32
    return %arg0, %c0_i32 : i32, i32
  }
  func.func @transform_1(%arg0: i32) -> (i32, i32) {
    %c0_i32 = arith.constant 0 : i32
    %c0_i32_0 = arith.constant 0 : i32
    %c0_i32_1 = arith.constant 0 : i32
    return %c0_i32, %c0_i32_0 : i32, i32
  }
  func.func @transform_2(%arg0: i32) -> (i32, i32) {
    %c0_i32 = arith.constant 0 : i32
    %c0_i32_0 = arith.constant 0 : i32
    %c0_i32_1 = arith.constant 0 : i32
    return %c0_i32, %c0_i32_0 : i32, i32
  }
  func.func @transform_3(%arg0: i32) -> (i32, i32) {
    %c0_i32 = arith.constant 0 : i32
    %c0_i32_0 = arith.constant 0 : i32
    return %c0_i32, %arg0 : i32, i32
  }
}

</mosaic_0001>

<bundles_post_ra>
// kernel: tpu_custom_call.1
= control target key start
LH: loop header
LB: loop body
LE: loop exit
PB: predicated region body
PF: predicated region fallthrough
CT: control target
= control target key end

     0   :  { %vm32_vm0 = vcmask 261120   ;;  %v380_v2 = vmov 0.0|0.0   ;;  %vm381_vm2 = vmmov 0   ;;  %v382_v5 = vmov 0.0   ;;  %s493_s0 = inlined_call_operand.vmem [shape: f32[8,32], index: 0, kind: input, shape index: {}]   ;;  %s494_s1 = inlined_call_operand.vmem [shape: f32[128,32], index: 1, kind: input, shape index: {}]   ;;  %s495_s2 = inlined_call_operand.vmem [shape: f32[1,128], index: 2, kind: input, shape index: {}]   ;;  %s496_s3 = inlined_call_operand.hbm [shape: f32[1,8], index: 3, kind: output, shape index: {}]  }
   0x1   :  { %v16_v0 = vld [vmem:[%s494_s1] sm:$0xff]  ;;  %v17_v1 = vld [vmem:[%s494_s1 + $0x8] sm:$0xff]  ;;  %320 = vmatprep.subr.bf16.mxu0 %v380_v2  ;;  %vm412_vm1 = vmpackc.low %vm32_vm0, %vm32_vm0  ;;  %312 = vmatprep.mubr.msk.f32.mxu0 %vm381_vm2, %v382_v5 }
   0x2   :  { %v321_v3 = vpack.c.bf16 %v17_v1, %v16_v0  ;;  %315 = vmatprep.subr.mxu1 %v382_v5  ;;  %317 = vmatprep.mubr.msk.f32.mxu1 %vm381_vm2, %v382_v5  ;;  %v18_v6 = vld [vmem:[%s494_s1 + $0x10] sm:$0xff]  ;;  %v19_v7 = vld [vmem:[%s494_s1 + $0x18] sm:$0xff] }
   0x4   :  { %323 = vmatpush3.bf16.xpose.msk.msra.mxu0 %vm412_vm1, %v321_v3 }
   0x5   :  { %324 = vmatprep.subr.bf16.mxu0 %v380_v2 }
   0x6   :  { %8 = vsyncpa [#allocation4], 0  ;;  %v325_v8 = vpack.c.bf16 %v19_v7, %v18_v6  ;;  %v20_v9 = vld [vmem:[%s494_s1 + $0x20] sm:$0xff]  ;;  %v21_v10 = vld [vmem:[%s494_s1 + $0x28] sm:$0xff]  ;;  %vm228_vm3 = vcmask 57344  }
   0x7   :  { %v329_v11 = vpack.c.bf16 %v21_v10, %v20_v9  ;;  %v22_v12 = vld [vmem:[%s494_s1 + $0x30] sm:$0xff]  ;;  %v23_v13 = vld [vmem:[%s494_s1 + $0x38] sm:$0xff]  ;;  %v24_v15 = vld [vmem:[%s494_s1 + $0x40] sm:$0xff] }
   0x8   :  { %v333_v14 = vpack.c.bf16 %v23_v13, %v22_v12  ;;  %v25_v16 = vld [vmem:[%s494_s1 + $0x48] sm:$0xff]  ;;  %v26_v18 = vld [vmem:[%s494_s1 + $0x50] sm:$0xff]  ;;  %v27_v19 = vld [vmem:[%s494_s1 + $0x58] sm:$0xff] }
   0x9   :  { %v337_v17 = vpack.c.bf16 %v25_v16, %v24_v15  ;;  %v341_v20 = vpack.c.bf16 %v27_v19, %v26_v18  ;;  %v28_v21 = vld [vmem:[%s494_s1 + $0x60] sm:$0xff]  ;;  %v29_v22 = vld [vmem:[%s494_s1 + $0x68] sm:$0xff]  ;;  %v30_v24 = vld [vmem:[%s494_s1 + $0x70] sm:$0xff] }
   0xa   :  { %v345_v23 = vpack.c.bf16 %v29_v22, %v28_v21  ;;  %v31_v25 = vld [vmem:[%s494_s1 + $0x78] sm:$0xff]  ;;  %v15_v27 = vld [vmem:[%s493_s0] sm:$0xff]  ;;  %s383_s1 = smov [#allocation3]  }
   0xb   :  { %v349_v26 = vpack.c.bf16 %v31_v25, %v30_v24  ;;  %v156_v31 = vld [vmem:[%s495_s2] sm:$0x1]  ;;  %s236_s21 = sshll.u32 %s383_s1, 4  ;;  %s237_s21 = int_to_ptr.vmem [resolvable:$true] %s236_s21 }
   0xc   :  { %327 = vmatpush3.bf16.xpose.msk.msra.mxu0 %vm412_vm1, %v325_v8  ;;  %s356_s22 = scalar_lea.vmem %s237_s21, 16  ;;  %s360_s0 = scalar_lea.vmem %s237_s21, 32 }
   0xd   :  { %328 = vmatprep.subr.bf16.mxu0 %v380_v2  ;;  %p357_p0 = scmp.ne.s32.totalorder %s237_s21, %s356_s22  ;;  %p361_p1 = scmp.lt.s32.totalorder %s237_s21, %s237_s21 }
   0xe   :  { %p362_p2 = scmp.lt.s32.totalorder %s360_s0, %s356_s22 }
  0x10   :  { %p363_p3 = por %p362_p2, %p361_p1 }
  0x12   :  { %p364_p4 = pnand %p363_p3, %p357_p0 }
  0x14   :  { %331 = vmatpush3.bf16.xpose.msk.msra.mxu0 %vm412_vm1, %v329_v11 }
  0x15   :  { %332 = vmatprep.subr.bf16.mxu0 %v380_v2 }
  0x1c   :  { %335 = vmatpush3.bf16.xpose.msk.msra.mxu0 %vm412_vm1, %v333_v14 }
  0x1d   :  { %336 = vmatprep.subr.bf16.mxu0 %v380_v2 }
  0x24   :  { %339 = vmatpush3.bf16.xpose.msk.msra.mxu0 %vm412_vm1, %v337_v17 }
  0x25   :  { %340 = vmatprep.subr.bf16.mxu0 %v380_v2 }
  0x2c   :  { %343 = vmatpush3.bf16.xpose.msk.msra.mxu0 %vm412_vm1, %v341_v20 }
  0x2d   :  { %344 = vmatprep.subr.bf16.mxu0 %v380_v2 }
  0x34   :  { %347 = vmatpush3.bf16.xpose.msk.msra.mxu0 %vm412_vm1, %v345_v23 }
  0x35   :  { %348 = vmatprep.subr.bf16.mxu0 %v380_v2 }
  0x3c   :  { %351 = vmatpush3.bf16.xpose.msk.msra.mxu0 %vm412_vm1, %v349_v26 }
  0x43   :  { %313 = vmatmul.mubr.msk.f32.vlgmr.msra.gmra.mrb[0].mxu0 %vm32_vm0, %v15_v27 }
 0x116   :  { %v150_v28 = vpop.f32.mrb[0].mxu0 }
 0x117   :  { %v154_v29 = vmax.f32 %v150_v28, 0.0  ;;  %v314_v30 = vpop.f32.mrb[1].mxu0 }
 0x119   :  { %316 = vmatpush3.xpose.msra.mxu1 %v154_v29 }
 0x11c   :  { %318 = vmatmul.mubr.f32.vlgmr.msra.gmra.mrb[0].mxu1 %v156_v31 }
 0x1ef   :  { %v224_v32 = vpop.f32.mrb[0].mxu1 }
 0x1f0   :  { %229 = vst.msk [vmem:[#allocation3] sm:$0x1] %vm228_vm3, %v224_v32  ;;  %v319_v33 = vpop.f32.mrb[1].mxu1 }
 0x1f1   :  { %367 = shalt.err (!%p364_p4)
}
 0x1f2   :  { %s368_s2 = scalar_lea.hbm %s496_s3, 16 }
 0x1f3   :  { %p369_p5 = scmp.ne.s32.totalorder %s496_s3, %s368_s2  ;;  %p372_p6 = scmp.lt.u32.totalorder %s368_s2, %s496_s3 }
 0x1f5   :  { %p374_p7 = pnand %p372_p6, %p369_p5 }
 0x1f7   :  { %377 = shalt.err (!%p374_p7)
}
 0x1f8   :  { %239 = dma.vmem_to_hbm [thread:$0]  %s237_s21, 16, %s496_s3, [#allocation4]  }
 0x1f9   :  { %378 = dma.done.wait [#allocation4], 16  }
 0x1fa   :  { %379 = vsyncadd [#allocation4], 4294967280 }
 0x1fb   :  { %243 = vsyncpa [#allocation4], 1 }

</bundles_post_ra>
